<compile_context>
chip_gen: v7x
topology: tpu7x:2x2x1
jax: 0.10.0
libtpu: 0.0.40
codegen_flags: <defaults>
</compile_context>

<pallas_src>
import functools

import jax
import jax.numpy as jnp
from jax.experimental import pallas as pl
from jax.experimental.pallas import tpu as pltpu


# ----------------------------------------------------------------------------
# Pallas kernel: fused  out = relu(x @ w + b), streamed over M row-tiles.
# ----------------------------------------------------------------------------
def _matmul_bias_relu_kernel(x_ref, w_ref, b_ref, o_ref):
    acc = jnp.dot(x_ref[...], w_ref[...], preferred_element_type=jnp.float32)
    acc = acc + b_ref[...]                      # (1, N) bias broadcasts over rows
    o_ref[...] = jnp.maximum(acc, 0.0).astype(o_ref.dtype)


def _round_up(x, m):
    return ((x + m - 1) // m) * m


@functools.cache
def _default_tile_m():
    # Bigger M tiles on 128-MiB-VMEM chips (v5e/v6e); smaller on v7x (64 MiB/TC).
    try:
        vmem_bytes = pltpu.get_tpu_info().vmem_capacity_bytes
    except Exception:
        vmem_bytes = 64 << 20
    return 1024 if vmem_bytes > (64 << 20) else 512


def matmul_bias_relu(x, w, b, *, tile_m=None):
    """relu(x @ w + b).  x: (M, K), w: (K, N), b: (N,) f32 -> (M, N) f32.

    Matmul inputs are cast to bf16 (f32 MXU accumulation).  The M axis is gridded
    ("parallel") so the x row-tiles are double-buffered and v7x megacore splits it;
    the weight/bias blocks map to (0, 0) on every step, i.e. stay VMEM-resident.
    """
    M, K = x.shape
    K2, N = w.shape
    assert K == K2
    if tile_m is None:
        tile_m = _default_tile_m()
    tm = min(tile_m, _round_up(M, 16))          # multiple of 16 (bf16 sublane pack)
    m_pad = _round_up(M, tm)

    xb = x.astype(jnp.bfloat16)
    if m_pad != M:
        xb = jnp.pad(xb, ((0, m_pad - M), (0, 0)))
    wb = w.astype(jnp.bfloat16)
    b2 = b.astype(jnp.float32).reshape(1, N)

    out = pl.pallas_call(
        _matmul_bias_relu_kernel,
        out_shape=jax.ShapeDtypeStruct((m_pad, N), jnp.float32),
        grid_spec=pltpu.PrefetchScalarGridSpec(
            num_scalar_prefetch=0,
            grid=(m_pad // tm,),
            in_specs=[
                pl.BlockSpec((tm, K), lambda i: (i, 0)),   # streamed row tiles
                pl.BlockSpec((K, N), lambda i: (0, 0)),    # weights resident
                pl.BlockSpec((1, N), lambda i: (0, 0)),    # bias resident
            ],
            out_specs=pl.BlockSpec((tm, N), lambda i: (i, 0)),
        ),
        compiler_params=pltpu.CompilerParams(
            dimension_semantics=("parallel",),
            vmem_limit_bytes=32 << 20,
        ),
    )(xb, wb, b2)
    return out[:M] if m_pad != M else out


# ----------------------------------------------------------------------------
# im2col glue (plain JAX strided slices / reshapes, no compute).
# K-axis ordering is (kh, kw, cin); the matmul weights use the matching layout.
# ----------------------------------------------------------------------------
def _conv_out(n, k, s):
    return (n - k) // s + 1


def im2col(x, kh, kw, stride):
    """x: (B, H, W, C) -> patches (B*Ho*Wo, kh*kw*C), plus (Ho, Wo)."""
    B, H, W, C = x.shape
    Ho = _conv_out(H, kh, stride)
    Wo = _conv_out(W, kw, stride)
    cols = []
    for i in range(kh):
        for j in range(kw):
            cols.append(x[:, i:i + stride * Ho:stride, j:j + stride * Wo:stride, :])
    p = jnp.stack(cols, axis=3)                            # (B, Ho, Wo, kh*kw, C)
    return p.reshape(B * Ho * Wo, kh * kw * C), Ho, Wo
# TODO(synk): fuse the im2col patch extraction into the Pallas kernel (overlapping
# per-M-tile input windows) to remove this HBM round trip for conv1/conv2.


def conv2d_relu(x, w_mat, b, kh, kw, stride):
    """PyTorch Conv2d(kernel=(kh,kw), stride, padding=0) + ReLU on NHWC input.
    w_mat: (kh*kw*cin, cout) in (kh, kw, cin) row order (bf16 or f32)."""
    B = x.shape[0]
    cout = w_mat.shape[1]
    patches, Ho, Wo = im2col(x, kh, kw, stride)            # (B*Ho*Wo, kh*kw*cin)
    out = matmul_bias_relu(patches, w_mat, b)              # (B*Ho*Wo, cout)
    return out.reshape(B, Ho, Wo, cout)


# ----------------------------------------------------------------------------
# CNNNet parameters + forward
# ----------------------------------------------------------------------------
def init_params(key, input_channels, num_actions, input_height, input_width):
    """Random init matching PyTorch defaults (uniform +/- 1/sqrt(fan_in)).
    Conv weights are (kh, kw, cin, cout); a PyTorch (cout, cin, kh, kw) tensor maps
    here via w.transpose(2, 3, 1, 0).  `wq` rows are in PyTorch's NCHW-flatten
    (c, h, w) order, i.e. wq == torch_linear.weight.T."""
    h1, w1 = _conv_out(input_height, 8, 4), _conv_out(input_width, 8, 4)
    h2, w2 = _conv_out(h1, 4, 2), _conv_out(w1, 4, 2)
    h3, w3 = _conv_out(h2, 3, 1), _conv_out(w2, 3, 1)
    n_flatten = 64 * h3 * w3
    ks = jax.random.split(key, 8)

    def conv_w(k, kh, kw, cin, cout):
        bound = 1.0 / (kh * kw * cin) ** 0.5
        return jax.random.uniform(k, (kh, kw, cin, cout), jnp.float32, -bound, bound)

    def vec(k, n, fan_in):
        bound = 1.0 / fan_in ** 0.5
        return jax.random.uniform(k, (n,), jnp.float32, -bound, bound)

    return {
        "w1": conv_w(ks[0], 8, 8, input_channels, 32),
        "b1": vec(ks[1], 32, 8 * 8 * input_channels),
        "w2": conv_w(ks[2], 4, 4, 32, 64),
        "b2": vec(ks[3], 64, 4 * 4 * 32),
        "w3": conv_w(ks[4], 3, 3, 64, 64),
        "b3": vec(ks[5], 64, 3 * 3 * 64),
        "wq": jax.random.uniform(ks[6], (n_flatten, num_actions), jnp.float32,
                                 -1.0 / n_flatten ** 0.5, 1.0 / n_flatten ** 0.5),
        "bq": vec(ks[7], num_actions, n_flatten),
    }


def prepare_params(params, input_channels, input_height, input_width):
    """One-time conversion to inference form: conv weights reshaped to matmul
    matrices and pre-cast to bf16; the Q-head weight rows are permuted from
    NCHW-flatten (c, h, w) order to NHWC-flatten (h, w, c) order so the forward
    needs no per-call transpose.  Numerically equivalent to the PyTorch forward."""
    C = input_channels
    h1, w1 = _conv_out(input_height, 8, 4), _conv_out(input_width, 8, 4)
    h2, w2 = _conv_out(h1, 4, 2), _conv_out(w1, 4, 2)
    h3, w3 = _conv_out(h2, 3, 1), _conv_out(w2, 3, 1)
    wq = params["wq"]                                      # (64*h3*w3, A), CHW rows
    num_actions = wq.shape[1]
    wq_nhwc = (wq.reshape(64, h3, w3, num_actions)
                 .transpose(1, 2, 0, 3)
                 .reshape(h3 * w3 * 64, num_actions))
    return {
        "w1m": params["w1"].reshape(8 * 8 * C, 32).astype(jnp.bfloat16),
        "b1": params["b1"].astype(jnp.float32),
        "w2m": params["w2"].reshape(4 * 4 * 32, 64).astype(jnp.bfloat16),
        "b2": params["b2"].astype(jnp.float32),
        "w3m": params["w3"].reshape(3 * 3 * 64, 64).astype(jnp.bfloat16),
        "b3": params["b3"].astype(jnp.float32),
        "wqm": wq_nhwc.astype(jnp.bfloat16),
        "bq": params["bq"].astype(jnp.float32),
    }


def cnn_net_forward(prep, obs, state=None):
    """obs: (B, H, W, C) float32 NHWC.  Returns (q_values, state).
    Matches PyTorch CNNNet.forward: 3x(Conv2d+ReLU) -> Flatten -> Linear -> ReLU
    (the module's q_estimate really does end in ReLU, so it is kept here)."""
    obs = obs.astype(jnp.float32)
    h = conv2d_relu(obs, prep["w1m"], prep["b1"], kh=8, kw=8, stride=4)
    h = conv2d_relu(h, prep["w2m"], prep["b2"], kh=4, kw=4, stride=2)
    h = conv2d_relu(h, prep["w3m"], prep["b3"], kh=3, kw=3, stride=1)
    B = h.shape[0]
    flat = h.reshape(B, -1)            # NHWC flatten; wqm rows already permuted
    q = matmul_bias_relu(flat, prep["wqm"], prep["bq"])
    return q, state


if __name__ == "__main__":
    # Small shapes consistent with the conv stack (padding=0, all-valid):
    #   36 -> (36-8)/4+1 = 8 -> (8-4)/2+1 = 3 -> (3-3)/1+1 = 1  =>  n_flatten = 64
    B, H, W, C = 2, 36, 36, 4
    num_actions = 6

    key = jax.random.PRNGKey(0)
    k_param, k_obs = jax.random.split(key)
    params = init_params(k_param, input_channels=C, num_actions=num_actions,
                         input_height=H, input_width=W)
    prep = prepare_params(params, input_channels=C, input_height=H, input_width=W)
    obs = jax.random.uniform(k_obs, (B, H, W, C), jnp.float32)

    fwd = jax.jit(cnn_net_forward)
    q, state = fwd(prep, obs)
    jax.block_until_ready(q)
    assert q.shape == (B, num_actions), q.shape
    print("KERNEL_OK")
</pallas_src>

<mosaic_0001>
module attributes {stable_mosaic.version = 11 : i64} {
  func.func @_matmul_bias_relu_kernel(%arg0: i32, %arg1: memref<128x256xbf16, #tpu.memory_space<vmem>>, %arg2: memref<256x32xbf16, #tpu.memory_space<vmem>>, %arg3: memref<1x32xf32, #tpu.memory_space<vmem>>, %arg4: memref<128x32xf32, #tpu.memory_space<vmem>>) attributes {dimension_semantics = [#tpu.dimension_semantics<parallel>], iteration_bounds = array<i64: 1>, scalar_prefetch = 0 : i64, scratch_operands = 0 : i64, tpu.core_type = #tpu.core_type<tc>, window_params = [{transform_indices = @transform_0, window_bounds = array<i64: 128, 256>}, {pipeline_mode = #tpu.pipeline_mode<synchronous>, transform_indices = @transform_1, window_bounds = array<i64: 256, 32>}, {pipeline_mode = #tpu.pipeline_mode<synchronous>, transform_indices = @transform_2, window_bounds = array<i64: 1, 32>}, {transform_indices = @transform_3, window_bounds = array<i64: 128, 32>}]} {
    %c0 = arith.constant 0 : index
    %c0_0 = arith.constant 0 : index
    %0 = vector.load %arg1[%c0, %c0_0] : memref<128x256xbf16, #tpu.memory_space<vmem>>, vector<128x256xbf16>
    %c0_1 = arith.constant 0 : index
    %c0_2 = arith.constant 0 : index
    %1 = vector.load %arg2[%c0_1, %c0_2] : memref<256x32xbf16, #tpu.memory_space<vmem>>, vector<256x32xbf16>
    %cst = arith.constant dense<0.000000e+00> : vector<128x32xf32>
    %2 = tpu.matmul %0, %1, %cst {dimension_numbers = #tpu.dot_dimension_numbers<[1], [0], [0], [1], [0, 0, 1, 1], [], []>} : vector<128x256xbf16>, vector<256x32xbf16>, vector<128x32xf32> -> vector<128x32xf32>
    %c0_3 = arith.constant 0 : index
    %c0_4 = arith.constant 0 : index
    %3 = vector.load %arg3[%c0_3, %c0_4] : memref<1x32xf32, #tpu.memory_space<vmem>>, vector<1x32xf32>
    %4 = vector.broadcast %3 : vector<1x32xf32> to vector<128x32xf32>
    %5 = arith.addf %2, %4 : vector<128x32xf32>
    %cst_5 = arith.constant 0.000000e+00 : f32
    %6 = vector.broadcast %cst_5 : f32 to vector<128x32xf32>
    %7 = arith.maximumf %5, %6 : vector<128x32xf32>
    %c0_6 = arith.constant 0 : index
    %c0_7 = arith.constant 0 : index
    %8 = vector.load %arg4[%c0_6, %c0_7] : memref<128x32xf32, #tpu.memory_space<vmem>>, vector<128x32xf32>
    tpu.vector_store %arg4[%c0_6, %c0_7], %7 {strides = array<i32>} : memref<128x32xf32, #tpu.memory_space<vmem>>, vector<128x32xf32>,
    return
  }
  func.func @transform_0(%arg0: i32) -> (i32, i32) {
    %c0_i32 = arith.constant 0 : i32
    %c0_i32_0 = arith.constant 0 : i32
    return %arg0, %c0_i32 : i32, i32
  }
  func.func @transform_1(%arg0: i32) -> (i32, i32) {
    %c0_i32 = arith.constant 0 : i32
    %c0_i32_0 = arith.constant 0 : i32
    %c0_i32_1 = arith.constant 0 : i32
    return %c0_i32, %c0_i32_0 : i32, i32
  }
  func.func @transform_2(%arg0: i32) -> (i32, i32) {
    %c0_i32 = arith.constant 0 : i32
    %c0_i32_0 = arith.constant 0 : i32
    %c0_i32_1 = arith.constant 0 : i32
    return %c0_i32, %c0_i32_0 : i32, i32
  }
  func.func @transform_3(%arg0: i32) -> (i32, i32) {
    %c0_i32 = arith.constant 0 : i32
    %c0_i32_0 = arith.constant 0 : i32
    return %arg0, %c0_i32 : i32, i32
  }
}

module attributes {stable_mosaic.version = 11 : i64} {
  func.func @_matmul_bias_relu_kernel(%arg0: i32, %arg1: memref<32x512xbf16, #tpu.memory_space<vmem>>, %arg2: memref<512x64xbf16, #tpu.memory_space<vmem>>, %arg3: memref<1x64xf32, #tpu.memory_space<vmem>>, %arg4: memref<32x64xf32, #tpu.memory_space<vmem>>) attributes {dimension_semantics = [#tpu.dimension_semantics<parallel>], iteration_bounds = array<i64: 1>, scalar_prefetch = 0 : i64, scratch_operands = 0 : i64, tpu.core_type = #tpu.core_type<tc>, window_params = [{transform_indices = @transform_0, window_bounds = array<i64: 32, 512>}, {pipeline_mode = #tpu.pipeline_mode<synchronous>, transform_indices = @transform_1, window_bounds = array<i64: 512, 64>}, {pipeline_mode = #tpu.pipeline_mode<synchronous>, transform_indices = @transform_2, window_bounds = array<i64: 1, 64>}, {transform_indices = @transform_3, window_bounds = array<i64: 32, 64>}]} {
    %c0 = arith.constant 0 : index
    %c0_0 = arith.constant 0 : index
    %0 = vector.load %arg1[%c0, %c0_0] : memref<32x512xbf16, #tpu.memory_space<vmem>>, vector<32x512xbf16>
    %c0_1 = arith.constant 0 : index
    %c0_2 = arith.constant 0 : index
    %1 = vector.load %arg2[%c0_1, %c0_2] : memref<512x64xbf16, #tpu.memory_space<vmem>>, vector<512x64xbf16>
    %cst = arith.constant dense<0.000000e+00> : vector<32x64xf32>
    %2 = tpu.matmul %0, %1, %cst {dimension_numbers = #tpu.dot_dimension_numbers<[1], [0], [0], [1], [0, 0, 1, 1], [], []>} : vector<32x512xbf16>, vector<512x64xbf16>, vector<32x64xf32> -> vector<32x64xf32>
    %c0_3 = arith.constant 0 : index
    %c0_4 = arith.constant 0 : index
    %3 = vector.load %arg3[%c0_3, %c0_4] : memref<1x64xf32, #tpu.memory_space<vmem>>, vector<1x64xf32>
    %4 = vector.broadcast %3 : vector<1x64xf32> to vector<32x64xf32>
    %5 = arith.addf %2, %4 : vector<32x64xf32>
    %cst_5 = arith.constant 0.000000e+00 : f32
    %6 = vector.broadcast %cst_5 : f32 to vector<32x64xf32>
    %7 = arith.maximumf %5, %6 : vector<32x64xf32>
    %c0_6 = arith.constant 0 : index
    %c0_7 = arith.constant 0 : index
    %8 = vector.load %arg4[%c0_6, %c0_7] : memref<32x64xf32, #tpu.memory_space<vmem>>, vector<32x64xf32>
    tpu.vector_store %arg4[%c0_6, %c0_7], %7 {strides = array<i32>} : memref<32x64xf32, #tpu.memory_space<vmem>>, vector<32x64xf32>,
    return
  }
  func.func @transform_0(%arg0: i32) -> (i32, i32) {
    %c0_i32 = arith.constant 0 : i32
    %c0_i32_0 = arith.constant 0 : i32
    return %arg0, %c0_i32 : i32, i32
  }
  func.func @transform_1(%arg0: i32) -> (i32, i32) {
    %c0_i32 = arith.constant 0 : i32
    %c0_i32_0 = arith.constant 0 : i32
    %c0_i32_1 = arith.constant 0 : i32
    return %c0_i32, %c0_i32_0 : i32, i32
  }
  func.func @transform_2(%arg0: i32) -> (i32, i32) {
    %c0_i32 = arith.constant 0 : i32
    %c0_i32_0 = arith.constant 0 : i32
    %c0_i32_1 = arith.constant 0 : i32
    return %c0_i32, %c0_i32_0 : i32, i32
  }
  func.func @transform_3(%arg0: i32) -> (i32, i32) {
    %c0_i32 = arith.constant 0 : i32
    %c0_i32_0 = arith.constant 0 : i32
    return %arg0, %c0_i32 : i32, i32
  }
}

module attributes {stable_mosaic.version = 11 : i64} {
  func.func @_matmul_bias_relu_kernel(%arg0: i32, %arg1: memref<16x576xbf16, #tpu.memory_space<vmem>>, %arg2: memref<576x64xbf16, #tpu.memory_space<vmem>>, %arg3: memref<1x64xf32, #tpu.memory_space<vmem>>, %arg4: memref<16x64xf32, #tpu.memory_space<vmem>>) attributes {dimension_semantics = [#tpu.dimension_semantics<parallel>], iteration_bounds = array<i64: 1>, scalar_prefetch = 0 : i64, scratch_operands = 0 : i64, tpu.core_type = #tpu.core_type<tc>, window_params = [{transform_indices = @transform_0, window_bounds = array<i64: 16, 576>}, {pipeline_mode = #tpu.pipeline_mode<synchronous>, transform_indices = @transform_1, window_bounds = array<i64: 576, 64>}, {pipeline_mode = #tpu.pipeline_mode<synchronous>, transform_indices = @transform_2, window_bounds = array<i64: 1, 64>}, {transform_indices = @transform_3, window_bounds = array<i64: 16, 64>}]} {
    %c0 = arith.constant 0 : index
    %c0_0 = arith.constant 0 : index
    %0 = vector.load %arg1[%c0, %c0_0] : memref<16x576xbf16, #tpu.memory_space<vmem>>, vector<16x576xbf16>
    %c0_1 = arith.constant 0 : index
    %c0_2 = arith.constant 0 : index
    %1 = vector.load %arg2[%c0_1, %c0_2] : memref<576x64xbf16, #tpu.memory_space<vmem>>, vector<576x64xbf16>
    %cst = arith.constant dense<0.000000e+00> : vector<16x64xf32>
    %2 = tpu.matmul %0, %1, %cst {dimension_numbers = #tpu.dot_dimension_numbers<[1], [0], [0], [1], [0, 0, 1, 1], [], []>} : vector<16x576xbf16>, vector<576x64xbf16>, vector<16x64xf32> -> vector<16x64xf32>
    %c0_3 = arith.constant 0 : index
    %c0_4 = arith.constant 0 : index
    %3 = vector.load %arg3[%c0_3, %c0_4] : memref<1x64xf32, #tpu.memory_space<vmem>>, vector<1x64xf32>
    %4 = vector.broadcast %3 : vector<1x64xf32> to vector<16x64xf32>
    %5 = arith.addf %2, %4 : vector<16x64xf32>
    %cst_5 = arith.constant 0.000000e+00 : f32
    %6 = vector.broadcast %cst_5 : f32 to vector<16x64xf32>
    %7 = arith.maximumf %5, %6 : vector<16x64xf32>
    %c0_6 = arith.constant 0 : index
    %c0_7 = arith.constant 0 : index
    %8 = vector.load %arg4[%c0_6, %c0_7] : memref<16x64xf32, #tpu.memory_space<vmem>>, vector<16x64xf32>
    tpu.vector_store %arg4[%c0_6, %c0_7], %7 {strides = array<i32>} : memref<16x64xf32, #tpu.memory_space<vmem>>, vector<16x64xf32>,
    return
  }
  func.func @transform_0(%arg0: i32) -> (i32, i32) {
    %c0_i32 = arith.constant 0 : i32
    %c0_i32_0 = arith.constant 0 : i32
    return %arg0, %c0_i32 : i32, i32
  }
  func.func @transform_1(%arg0: i32) -> (i32, i32) {
    %c0_i32 = arith.constant 0 : i32
    %c0_i32_0 = arith.constant 0 : i32
    %c0_i32_1 = arith.constant 0 : i32
    return %c0_i32, %c0_i32_0 : i32, i32
  }
  func.func @transform_2(%arg0: i32) -> (i32, i32) {
    %c0_i32 = arith.constant 0 : i32
    %c0_i32_0 = arith.constant 0 : i32
    %c0_i32_1 = arith.constant 0 : i32
    return %c0_i32, %c0_i32_0 : i32, i32
  }
  func.func @transform_3(%arg0: i32) -> (i32, i32) {
    %c0_i32 = arith.constant 0 : i32
    %c0_i32_0 = arith.constant 0 : i32
    return %arg0, %c0_i32 : i32, i32
  }
}

module attributes {stable_mosaic.version = 11 : i64} {
  func.func @_matmul_bias_relu_kernel(%arg0: i32, %arg1: memref<16x64xbf16, #tpu.memory_space<vmem>>, %arg2: memref<64x6xbf16, #tpu.memory_space<vmem>>, %arg3: memref<1x6xf32, #tpu.memory_space<vmem>>, %arg4: memref<16x6xf32, #tpu.memory_space<vmem>>) attributes {dimension_semantics = [#tpu.dimension_semantics<parallel>], iteration_bounds = array<i64: 1>, scalar_prefetch = 0 : i64, scratch_operands = 0 : i64, tpu.core_type = #tpu.core_type<tc>, window_params = [{transform_indices = @transform_0, window_bounds = array<i64: 16, 64>}, {pipeline_mode = #tpu.pipeline_mode<synchronous>, transform_indices = @transform_1, window_bounds = array<i64: 64, 6>}, {pipeline_mode = #tpu.pipeline_mode<synchronous>, transform_indices = @transform_2, window_bounds = array<i64: 1, 6>}, {transform_indices = @transform_3, window_bounds = array<i64: 16, 6>}]} {
    %c0 = arith.constant 0 : index
    %c0_0 = arith.constant 0 : index
    %0 = vector.load %arg1[%c0, %c0_0] : memref<16x64xbf16, #tpu.memory_space<vmem>>, vector<16x64xbf16>
    %c0_1 = arith.constant 0 : index
    %c0_2 = arith.constant 0 : index
    %1 = vector.load %arg2[%c0_1, %c0_2] : memref<64x6xbf16, #tpu.memory_space<vmem>>, vector<64x6xbf16>
    %cst = arith.constant dense<0.000000e+00> : vector<16x6xf32>
    %2 = tpu.matmul %0, %1, %cst {dimension_numbers = #tpu.dot_dimension_numbers<[1], [0], [0], [1], [0, 0, 1, 1], [], []>} : vector<16x64xbf16>, vector<64x6xbf16>, vector<16x6xf32> -> vector<16x6xf32>
    %c0_3 = arith.constant 0 : index
    %c0_4 = arith.constant 0 : index
    %3 = vector.load %arg3[%c0_3, %c0_4] : memref<1x6xf32, #tpu.memory_space<vmem>>, vector<1x6xf32>
    %4 = vector.broadcast %3 : vector<1x6xf32> to vector<16x6xf32>
    %5 = arith.addf %2, %4 : vector<16x6xf32>
    %cst_5 = arith.constant 0.000000e+00 : f32
    %6 = vector.broadcast %cst_5 : f32 to vector<16x6xf32>
    %7 = arith.maximumf %5, %6 : vector<16x6xf32>
    %c0_6 = arith.constant 0 : index
    %c0_7 = arith.constant 0 : index
    %8 = vector.load %arg4[%c0_6, %c0_7] : memref<16x6xf32, #tpu.memory_space<vmem>>, vector<16x6xf32>
    tpu.vector_store %arg4[%c0_6, %c0_7], %7 {strides = array<i32>} : memref<16x6xf32, #tpu.memory_space<vmem>>, vector<16x6xf32>,
    return
  }
  func.func @transform_0(%arg0: i32) -> (i32, i32) {
    %c0_i32 = arith.constant 0 : i32
    %c0_i32_0 = arith.constant 0 : i32
    return %arg0, %c0_i32 : i32, i32
  }
  func.func @transform_1(%arg0: i32) -> (i32, i32) {
    %c0_i32 = arith.constant 0 : i32
    %c0_i32_0 = arith.constant 0 : i32
    %c0_i32_1 = arith.constant 0 : i32
    return %c0_i32, %c0_i32_0 : i32, i32
  }
  func.func @transform_2(%arg0: i32) -> (i32, i32) {
    %c0_i32 = arith.constant 0 : i32
    %c0_i32_0 = arith.constant 0 : i32
    %c0_i32_1 = arith.constant 0 : i32
    return %c0_i32, %c0_i32_0 : i32, i32
  }
  func.func @transform_3(%arg0: i32) -> (i32, i32) {
    %c0_i32 = arith.constant 0 : i32
    %c0_i32_0 = arith.constant 0 : i32
    return %arg0, %c0_i32 : i32, i32
  }
}

</mosaic_0001>

<bundles_post_ra>
// kernel: cnn_net_forward.4
= control target key start
LH: loop header
LB: loop body
LE: loop exit
PB: predicated region body
PF: predicated region fallthrough
CT: control target
= control target key end

     0   :  { %vm359_vm0 = vcmask 261120   ;;  %s734_s1 = inlined_call_operand.vmem [shape: bf16[256,32], index: 1, kind: input, shape index: {}]   ;;  %s735_s0 = inlined_call_operand.vmem [shape: bf16[128,256], index: 0, kind: input, shape index: {}]   ;;  %s736_s2 = inlined_call_operand.vmem [shape: f32[1,32], index: 2, kind: input, shape index: {}]   ;;  %s737_s3 = inlined_call_operand.vmem [shape: f32[128,32], index: 3, kind: output, shape index: {}]  }
   0x1   :  { %v493_v0 = vld [vmem:[%s734_s1 + $0x40] sm:$0xff]   ;;  %v495_v2 = vld [vmem:[%s734_s1 + $0x48] sm:$0xff]   ;;  %v497_v4 = vld [vmem:[%s734_s1 + $0x50] sm:$0xff]  }
   0x2   :  { %v494_v1 = vld [vmem:[%s734_s1] sm:$0xff]   ;;  %413 = vmatprep.subr.bf16.mxu0 %v493_v0  ;;  %477 = vmatprep.subr.bf16.mxu1 %v493_v0  ;;  %v496_v3 = vld [vmem:[%s734_s1 + $0x8] sm:$0xff]   ;;  %v498_v5 = vld [vmem:[%s734_s1 + $0x10] sm:$0xff]  }
   0x3   :  { %414 = vmatpush3.bf16.msra.mxu0 %v494_v1  ;;  %485 = vmatpush3.bf16.msra.mxu1 %v494_v1  ;;  %v499_v6 = vld [vmem:[%s734_s1 + $0x58] sm:$0xff]   ;;  %v501_v8 = vld [vmem:[%s734_s1 + $0x60] sm:$0xff]   ;;  %v503_v10 = vld [vmem:[%s734_s1 + $0x68] sm:$0xff]  }
   0x4   :  { %415 = vmatprep.subr.bf16.mxu0 %v495_v2  ;;  %478 = vmatprep.subr.bf16.mxu1 %v495_v2  ;;  %v500_v7 = vld [vmem:[%s734_s1 + $0x18] sm:$0xff]   ;;  %v502_v9 = vld [vmem:[%s734_s1 + $0x20] sm:$0xff]   ;;  %v504_v13 = vld [vmem:[%s734_s1 + $0x28] sm:$0xff]  }
   0x5   :  { %v511_v11 = vld [vmem:[%s735_s0 + $0x4] ss:$8 sps:$4 sm:$0xff]   ;;  %v505_v14 = vld [vmem:[%s734_s1 + $0x70] sm:$0xff]   ;;  %v507_v16 = vld [vmem:[%s734_s1 + $0x78] sm:$0xff]  }
   0x6   :  { %v514_v12 = vld [vmem:[%s735_s0 + $0x44] ss:$8 sps:$4 sm:$0xff]   ;;  %278 = vmatprep.mubr.bf16.mxu0 %v511_v11  ;;  %v506_v15 = vld [vmem:[%s734_s1 + $0x30] sm:$0xff]   ;;  %v508_v17 = vld [vmem:[%s734_s1 + $0x38] sm:$0xff]  }
   0x7   :  { %416 = vmatpush3.bf16.msra.mxu0 %v496_v3  ;;  %486 = vmatpush3.bf16.msra.mxu1 %v496_v3  ;;  %v509_v18 = vld [vmem:[%s735_s0] ss:$8 sps:$4 sm:$0xff]   ;;  %v515_v20 = vld [vmem:[%s735_s0 + $0x14] ss:$8 sps:$4 sm:$0xff]   ;;  %v519_v22 = vld [vmem:[%s735_s0 + $0x10] ss:$8 sps:$4 sm:$0xff]  }
   0x8   :  { %417 = vmatprep.subr.bf16.mxu0 %v497_v4  ;;  %479 = vmatprep.subr.bf16.mxu1 %v497_v4  ;;  %v512_v19 = vld [vmem:[%s735_s0 + $0x40] ss:$8 sps:$4 sm:$0xff]   ;;  %v517_v21 = vld [vmem:[%s735_s0 + $0x54] ss:$8 sps:$4 sm:$0xff]   ;;  %v520_v23 = vld [vmem:[%s735_s0 + $0x50] ss:$8 sps:$4 sm:$0xff]  }
   0x9   :  { %310 = vmatprep.mubr.bf16.mxu1 %v514_v12  ;;  %v521_v24 = vld [vmem:[%s735_s0 + $0x24] ss:$8 sps:$4 sm:$0xff]   ;;  %v525_v26 = vld [vmem:[%s735_s0 + $0x20] ss:$8 sps:$4 sm:$0xff]   ;;  %v527_v28 = vld [vmem:[%s735_s0 + $0x34] ss:$8 sps:$4 sm:$0xff]  }
   0xa   :  { %v523_v25 = vld [vmem:[%s735_s0 + $0x64] ss:$8 sps:$4 sm:$0xff]   ;;  %v526_v27 = vld [vmem:[%s735_s0 + $0x60] ss:$8 sps:$4 sm:$0xff]   ;;  %v529_v29 = vld [vmem:[%s735_s0 + $0x74] ss:$8 sps:$4 sm:$0xff]  }
   0xb   :  { %418 = vmatpush3.bf16.msra.mxu0 %v498_v5  ;;  %487 = vmatpush3.bf16.msra.mxu1 %v498_v5  ;;  %v531_v30 = vld [vmem:[%s735_s0 + $0x30] ss:$8 sps:$4 sm:$0xff]   ;;  %v652_v34 = vld [vmem:[%s736_s2] ss:$0 sm:$0xff] }
   0xc   :  { %419 = vmatprep.subr.bf16.mxu0 %v499_v6  ;;  %480 = vmatprep.subr.bf16.mxu1 %v499_v6  ;;  %v532_v31 = vld [vmem:[%s735_s0 + $0x70] ss:$8 sps:$4 sm:$0xff]  }
   0xf   :  { %420 = vmatpush3.bf16.msra.mxu0 %v500_v7  ;;  %488 = vmatpush3.bf16.msra.mxu1 %v500_v7 }
  0x10   :  { %421 = vmatprep.subr.bf16.mxu0 %v501_v8  ;;  %481 = vmatprep.subr.bf16.mxu1 %v501_v8 }
  0x13   :  { %422 = vmatpush3.bf16.msra.mxu0 %v502_v9  ;;  %489 = vmatpush3.bf16.msra.mxu1 %v502_v9 }
  0x14   :  { %423 = vmatprep.subr.bf16.mxu0 %v503_v10  ;;  %482 = vmatprep.subr.bf16.mxu1 %v503_v10 }
  0x17   :  { %424 = vmatpush3.bf16.msra.mxu0 %v504_v13  ;;  %490 = vmatpush3.bf16.msra.mxu1 %v504_v13 }
  0x18   :  { %425 = vmatprep.subr.bf16.mxu0 %v505_v14  ;;  %483 = vmatprep.subr.bf16.mxu1 %v505_v14 }
  0x1b   :  { %426 = vmatpush3.bf16.msra.mxu0 %v506_v15  ;;  %491 = vmatpush3.bf16.msra.mxu1 %v506_v15 }
  0x1c   :  { %427 = vmatprep.subr.bf16.mxu0 %v507_v16  ;;  %484 = vmatprep.subr.bf16.mxu1 %v507_v16 }
  0x1f   :  { %428 = vmatpush3.bf16.msra.mxu0 %v508_v17  ;;  %492 = vmatpush3.bf16.msra.mxu1 %v508_v17 }
  0x22   :  { %279 = vmatmul.mubr.bf16.vlgmr.msra.gmra.mrb[0].mxu0 %v509_v18  ;;  %311 = vmatmul.mubr.bf16.vlgmr.msra.gmra.mrb[0].mxu1 %v512_v19 }
  0x23   :  { %286 = vmatprep.mubr.bf16.mxu0 %v515_v20  ;;  %318 = vmatprep.mubr.bf16.mxu1 %v517_v21 }
  0x2a   :  { %287 = vmatmul.mubr.bf16.gmra.mrb[4].mxu0 %v519_v22  ;;  %319 = vmatmul.mubr.bf16.gmra.mrb[4].mxu1 %v520_v23 }
  0x2b   :  { %294 = vmatprep.mubr.bf16.mxu0 %v521_v24  ;;  %326 = vmatprep.mubr.bf16.mxu1 %v523_v25 }
  0x32   :  { %295 = vmatmul.mubr.bf16.gmra.mrb[8].mxu0 %v525_v26  ;;  %327 = vmatmul.mubr.bf16.gmra.mrb[8].mxu1 %v526_v27 }
  0x33   :  { %302 = vmatprep.mubr.bf16.mxu0 %v527_v28  ;;  %334 = vmatprep.mubr.bf16.mxu1 %v529_v29 }
  0x3a   :  { %303 = vmatmul.mubr.bf16.gmra.mrb[12].mxu0 %v531_v30  ;;  %335 = vmatmul.mubr.bf16.gmra.mrb[12].mxu1 %v532_v31 }
  0xf5   :  { %v429_v32 = vpop.f32.mrb[0].mxu0  ;;  %v453_v33 = vpop.f32.mrb[0].mxu1 }
  0xf6   :  { %v430_v35 = vpop.f32.mrb[1].mxu0  ;;  %v454_v36 = vpop.f32.mrb[1].mxu1 }
  0xf7   :  { %v431_v37 = vadd.f32 %v430_v35, %v429_v32  ;;  %v455_v38 = vadd.f32 %v454_v36, %v453_v33  ;;  %v432_v39 = vpop.f32.mrb[2].mxu0  ;;  %v456_v40 = vpop.f32.mrb[2].mxu1 }
  0xf8   :  { %v433_v41 = vpop.f32.mrb[3].mxu0  ;;  %v457_v42 = vpop.f32.mrb[3].mxu1 }
  0xf9   :  { %v281_v43 = vadd.f32 %v431_v37, %v652_v34  ;;  %v313_v44 = vadd.f32 %v455_v38, %v652_v34  ;;  %v434_v45 = vadd.f32 %v433_v41, %v432_v39  ;;  %v458_v46 = vadd.f32 %v457_v42, %v456_v40 }
  0xfb   :  { %v343_v47 = vmax.f32 %v281_v43, 0.0  ;;  %v351_v48 = vmax.f32 %v313_v44, 0.0  ;;  %v284_v49 = vadd.f32 %v434_v45, %v652_v34  ;;  %v316_v50 = vadd.f32 %v458_v46, %v652_v34 }
  0xfd   :  { %360 = vst.msk [vmem:[%s737_s3] sm:$0xff] %vm359_vm0, %v343_v47  ;;  %368 = vst.msk [vmem:[%s737_s3 + $0x40] sm:$0xff] %vm359_vm0, %v351_v48  ;;  %v344_v51 = vmax.f32 %v284_v49, 0.0  ;;  %v352_v52 = vmax.f32 %v316_v50, 0.0  ;;  %v435_v53 = vpop.f32.mrb[4].mxu0  ;;  %v459_v54 = vpop.f32.mrb[4].mxu1 }
  0xfe   :  { %v436_v55 = vpop.f32.mrb[5].mxu0  ;;  %v460_v56 = vpop.f32.mrb[5].mxu1 }
  0xff   :  { %361 = vst.msk [vmem:[%s737_s3 + $0x8] sm:$0xff] %vm359_vm0, %v344_v51  ;;  %369 = vst.msk [vmem:[%s737_s3 + $0x48] sm:$0xff] %vm359_vm0, %v352_v52  ;;  %v437_v57 = vadd.f32 %v436_v55, %v435_v53  ;;  %v461_v58 = vadd.f32 %v460_v56, %v459_v54  ;;  %v438_v59 = vpop.f32.mrb[6].mxu0  ;;  %v462_v60 = vpop.f32.mrb[6].mxu1 }
 0x100   :  { %v439_v61 = vpop.f32.mrb[7].mxu0  ;;  %v463_v62 = vpop.f32.mrb[7].mxu1 }
 0x101   :  { %v289_v63 = vadd.f32 %v437_v57, %v652_v34  ;;  %v321_v0 = vadd.f32 %v461_v58, %v652_v34  ;;  %v440_v1 = vadd.f32 %v439_v61, %v438_v59  ;;  %v464_v2 = vadd.f32 %v463_v62, %v462_v60 }
 0x103   :  { %v345_v3 = vmax.f32 %v289_v63, 0.0  ;;  %v353_v4 = vmax.f32 %v321_v0, 0.0  ;;  %v292_v5 = vadd.f32 %v440_v1, %v652_v34  ;;  %v324_v6 = vadd.f32 %v464_v2, %v652_v34 }
 0x105   :  { %362 = vst.msk [vmem:[%s737_s3 + $0x10] sm:$0xff] %vm359_vm0, %v345_v3  ;;  %370 = vst.msk [vmem:[%s737_s3 + $0x50] sm:$0xff] %vm359_vm0, %v353_v4  ;;  %v346_v7 = vmax.f32 %v292_v5, 0.0  ;;  %v354_v8 = vmax.f32 %v324_v6, 0.0  ;;  %v441_v9 = vpop.f32.mrb[8].mxu0  ;;  %v465_v10 = vpop.f32.mrb[8].mxu1 }
 0x106   :  { %v442_v11 = vpop.f32.mrb[9].mxu0  ;;  %v466_v12 = vpop.f32.mrb[9].mxu1 }
 0x107   :  { %363 = vst.msk [vmem:[%s737_s3 + $0x18] sm:$0xff] %vm359_vm0, %v346_v7  ;;  %371 = vst.msk [vmem:[%s737_s3 + $0x58] sm:$0xff] %vm359_vm0, %v354_v8  ;;  %v443_v13 = vadd.f32 %v442_v11, %v441_v9  ;;  %v467_v14 = vadd.f32 %v466_v12, %v465_v10  ;;  %v444_v15 = vpop.f32.mrb[10].mxu0  ;;  %v468_v16 = vpop.f32.mrb[10].mxu1 }
 0x108   :  { %v445_v17 = vpop.f32.mrb[11].mxu0  ;;  %v469_v18 = vpop.f32.mrb[11].mxu1 }
 0x109   :  { %v297_v19 = vadd.f32 %v443_v13, %v652_v34  ;;  %v329_v20 = vadd.f32 %v467_v14, %v652_v34  ;;  %v446_v21 = vadd.f32 %v445_v17, %v444_v15  ;;  %v470_v22 = vadd.f32 %v469_v18, %v468_v16 }
 0x10b   :  { %v347_v23 = vmax.f32 %v297_v19, 0.0  ;;  %v355_v24 = vmax.f32 %v329_v20, 0.0  ;;  %v300_v25 = vadd.f32 %v446_v21, %v652_v34  ;;  %v332_v26 = vadd.f32 %v470_v22, %v652_v34 }
 0x10d   :  { %364 = vst.msk [vmem:[%s737_s3 + $0x20] sm:$0xff] %vm359_vm0, %v347_v23  ;;  %372 = vst.msk [vmem:[%s737_s3 + $0x60] sm:$0xff] %vm359_vm0, %v355_v24  ;;  %v348_v27 = vmax.f32 %v300_v25, 0.0  ;;  %v356_v28 = vmax.f32 %v332_v26, 0.0  ;;  %v447_v29 = vpop.f32.mrb[12].mxu0  ;;  %v471_v30 = vpop.f32.mrb[12].mxu1 }
 0x10e   :  { %v448_v31 = vpop.f32.mrb[13].mxu0  ;;  %v472_v32 = vpop.f32.mrb[13].mxu1 }
 0x10f   :  { %365 = vst.msk [vmem:[%s737_s3 + $0x28] sm:$0xff] %vm359_vm0, %v348_v27  ;;  %373 = vst.msk [vmem:[%s737_s3 + $0x68] sm:$0xff] %vm359_vm0, %v356_v28  ;;  %v449_v33 = vadd.f32 %v448_v31, %v447_v29  ;;  %v473_v35 = vadd.f32 %v472_v32, %v471_v30  ;;  %v450_v36 = vpop.f32.mrb[14].mxu0  ;;  %v474_v37 = vpop.f32.mrb[14].mxu1 }
 0x110   :  { %v451_v38 = vpop.f32.mrb[15].mxu0  ;;  %v475_v39 = vpop.f32.mrb[15].mxu1 }
 0x111   :  { %v305_v40 = vadd.f32 %v449_v33, %v652_v34  ;;  %v337_v41 = vadd.f32 %v473_v35, %v652_v34  ;;  %v452_v42 = vadd.f32 %v451_v38, %v450_v36  ;;  %v476_v43 = vadd.f32 %v475_v39, %v474_v37 }
 0x113   :  { %v349_v44 = vmax.f32 %v305_v40, 0.0  ;;  %v357_v45 = vmax.f32 %v337_v41, 0.0  ;;  %v308_v46 = vadd.f32 %v452_v42, %v652_v34  ;;  %v340_v47 = vadd.f32 %v476_v43, %v652_v34 }
 0x115   :  { %366 = vst.msk [vmem:[%s737_s3 + $0x30] sm:$0xff] %vm359_vm0, %v349_v44  ;;  %374 = vst.msk [vmem:[%s737_s3 + $0x70] sm:$0xff] %vm359_vm0, %v357_v45  ;;  %v350_v48 = vmax.f32 %v308_v46, 0.0  ;;  %v358_v49 = vmax.f32 %v340_v47, 0.0 }
 0x117   :  { %367 = vst.msk [vmem:[%s737_s3 + $0x38] sm:$0xff] %vm359_vm0, %v350_v48  ;;  %375 = vst.msk [vmem:[%s737_s3 + $0x78] sm:$0xff] %vm359_vm0, %v358_v49 }

// kernel: cnn_net_forward.5
= control target key start
LH: loop header
LB: loop body
LE: loop exit
PB: predicated region body
PF: predicated region fallthrough
CT: control target
= control target key end

     0   :  { %vm428_vm0 = vcmask 523264   ;;  %s737_s1 = inlined_call_operand.vmem [shape: bf16[512,64], index: 1, kind: input, shape index: {}]   ;;  %s738_s0 = inlined_call_operand.vmem [shape: bf16[32,512], index: 0, kind: input, shape index: {}]   ;;  %s739_s2 = inlined_call_operand.vmem [shape: f32[1,64], index: 2, kind: input, shape index: {}]   ;;  %s740_s3 = inlined_call_operand.vmem [shape: f32[32,64], index: 3, kind: output, shape index: {}]  }
   0x1   :  { %v534_v0 = vld [vmem:[%s737_s1 + $0x40] sm:$0xff]   ;;  %v538_v4 = vld [vmem:[%s737_s1 + $0x48] sm:$0xff]   ;;  %v542_v8 = vld [vmem:[%s737_s1 + $0x50] sm:$0xff]  }
   0x2   :  { %v535_v1 = vld [vmem:[%s737_s1 + $0xc0] sm:$0xff]   ;;  %478 = vmatprep.subr.bf16.mxu0 %v534_v0  ;;  %v539_v5 = vld [vmem:[%s737_s1 + $0xc8] sm:$0xff]   ;;  %v543_v9 = vld [vmem:[%s737_s1 + $0xd0] sm:$0xff]  }
   0x3   :  { %v536_v2 = vld [vmem:[%s737_s1] sm:$0xff]   ;;  %506 = vmatprep.subr.bf16.mxu1 %v535_v1  ;;  %v540_v6 = vld [vmem:[%s737_s1 + $0x8] sm:$0xff]   ;;  %v544_v10 = vld [vmem:[%s737_s1 + $0x10] sm:$0xff]  }
   0x4   :  { %v537_v3 = vld [vmem:[%s737_s1 + $0x80] sm:$0xff]   ;;  %479 = vmatpush3.bf16.msra.mxu0 %v536_v2  ;;  %v541_v7 = vld [vmem:[%s737_s1 + $0x88] sm:$0xff]   ;;  %v545_v11 = vld [vmem:[%s737_s1 + $0x90] sm:$0xff]  }
   0x5   :  { %507 = vmatpush3.bf16.msra.mxu1 %v537_v3  ;;  %480 = vmatprep.subr.bf16.mxu0 %v538_v4  ;;  %v546_v12 = vld [vmem:[%s737_s1 + $0x58] sm:$0xff]   ;;  %v550_v16 = vld [vmem:[%s737_s1 + $0x60] sm:$0xff]   ;;  %v554_v20 = vld [vmem:[%s737_s1 + $0x68] sm:$0xff]  }
   0x6   :  { %508 = vmatprep.subr.bf16.mxu1 %v539_v5  ;;  %v547_v13 = vld [vmem:[%s737_s1 + $0xd8] sm:$0xff]   ;;  %v551_v17 = vld [vmem:[%s737_s1 + $0xe0] sm:$0xff]   ;;  %v555_v21 = vld [vmem:[%s737_s1 + $0xe8] sm:$0xff]  }
   0x7   :  { %v548_v14 = vld [vmem:[%s737_s1 + $0x18] sm:$0xff]   ;;  %v552_v18 = vld [vmem:[%s737_s1 + $0x20] sm:$0xff]   ;;  %v556_v22 = vld [vmem:[%s737_s1 + $0x28] sm:$0xff]  }
   0x8   :  { %481 = vmatpush3.bf16.msra.mxu0 %v540_v6  ;;  %v549_v15 = vld [vmem:[%s737_s1 + $0x98] sm:$0xff]   ;;  %v553_v19 = vld [vmem:[%s737_s1 + $0xa0] sm:$0xff]   ;;  %v557_v23 = vld [vmem:[%s737_s1 + $0xa8] sm:$0xff]  }
   0x9   :  { %509 = vmatpush3.bf16.msra.mxu1 %v541_v7  ;;  %482 = vmatprep.subr.bf16.mxu0 %v542_v8  ;;  %v558_v24 = vld [vmem:[%s737_s1 + $0x70] sm:$0xff]   ;;  %v562_v28 = vld [vmem:[%s737_s1 + $0x78] sm:$0xff]   ;;  %v437_v42 = vld [vmem:[%s739_s2] ss:$0 sm:$0xff] }
   0xa   :  { %510 = vmatprep.subr.bf16.mxu1 %v543_v9  ;;  %v559_v25 = vld [vmem:[%s737_s1 + $0xf0] sm:$0xff]   ;;  %v563_v29 = vld [vmem:[%s737_s1 + $0xf8] sm:$0xff]  }
   0xb   :  { %v560_v26 = vld [vmem:[%s737_s1 + $0x30] sm:$0xff]   ;;  %v564_v30 = vld [vmem:[%s737_s1 + $0x38] sm:$0xff]  }
   0xc   :  { %483 = vmatpush3.bf16.msra.mxu0 %v544_v10  ;;  %v561_v27 = vld [vmem:[%s737_s1 + $0xb0] sm:$0xff]   ;;  %v565_v31 = vld [vmem:[%s737_s1 + $0xb8] sm:$0xff]  }
   0xd   :  { %511 = vmatpush3.bf16.msra.mxu1 %v545_v11  ;;  %484 = vmatprep.subr.bf16.mxu0 %v546_v12  ;;  %v566_v32 = vld [vmem:[%s738_s0] ss:$16 sps:$4 sm:$0xff]   ;;  %v568_v33 = vld [vmem:[%s738_s0 + $0x4] ss:$16 sps:$4 sm:$0xff]   ;;  %v569_v34 = vld [vmem:[%s738_s0 + $0x8] ss:$16 sps:$4 sm:$0xff]  }
   0xe   :  { %512 = vmatprep.subr.bf16.mxu1 %v547_v13  ;;  %v571_v35 = vld [vmem:[%s738_s0 + $0xc] ss:$16 sps:$4 sm:$0xff]   ;;  %358 = vmatprep.mubr.bf16.mxu0 %v568_v33  ;;  %v572_v36 = vld [vmem:[%s738_s0 + $0x24] ss:$16 sps:$4 sm:$0xff]   ;;  %v576_v38 = vld [vmem:[%s738_s0 + $0x20] ss:$16 sps:$4 sm:$0xff]  }
   0xf   :  { %407 = vmatprep.mubr.bf16.mxu1 %v571_v35  ;;  %v574_v37 = vld [vmem:[%s738_s0 + $0x2c] ss:$16 sps:$4 sm:$0xff]   ;;  %v577_v39 = vld [vmem:[%s738_s0 + $0x28] ss:$16 sps:$4 sm:$0xff]  }
  0x10   :  { %485 = vmatpush3.bf16.msra.mxu0 %v548_v14 }
  0x11   :  { %513 = vmatpush3.bf16.msra.mxu1 %v549_v15  ;;  %486 = vmatprep.subr.bf16.mxu0 %v550_v16 }
  0x12   :  { %514 = vmatprep.subr.bf16.mxu1 %v551_v17 }
  0x14   :  { %487 = vmatpush3.bf16.msra.mxu0 %v552_v18 }
  0x15   :  { %515 = vmatpush3.bf16.msra.mxu1 %v553_v19  ;;  %488 = vmatprep.subr.bf16.mxu0 %v554_v20 }
  0x16   :  { %516 = vmatprep.subr.bf16.mxu1 %v555_v21 }
  0x18   :  { %489 = vmatpush3.bf16.msra.mxu0 %v556_v22 }
  0x19   :  { %517 = vmatpush3.bf16.msra.mxu1 %v557_v23  ;;  %490 = vmatprep.subr.bf16.mxu0 %v558_v24 }
  0x1a   :  { %518 = vmatprep.subr.bf16.mxu1 %v559_v25 }
  0x1c   :  { %491 = vmatpush3.bf16.msra.mxu0 %v560_v26 }
  0x1d   :  { %519 = vmatpush3.bf16.msra.mxu1 %v561_v27  ;;  %492 = vmatprep.subr.bf16.mxu0 %v562_v28 }
  0x1e   :  { %520 = vmatprep.subr.bf16.mxu1 %v563_v29 }
  0x20   :  { %493 = vmatpush3.bf16.msra.mxu0 %v564_v30 }
  0x21   :  { %521 = vmatpush3.bf16.msra.mxu1 %v565_v31 }
  0x23   :  { %359 = vmatmul.mubr.bf16.vlgmr.msra.gmra.mrb[0].mxu0 %v566_v32 }
  0x24   :  { %408 = vmatmul.mubr.bf16.vlgmr.msra.gmra.mrb[0].mxu1 %v569_v34  ;;  %366 = vmatprep.mubr.bf16.mxu0 %v572_v36 }
  0x25   :  { %415 = vmatprep.mubr.bf16.mxu1 %v574_v37 }
  0x2b   :  { %367 = vmatmul.mubr.bf16.gmra.mrb[4].mxu0 %v576_v38 }
  0x2c   :  { %416 = vmatmul.mubr.bf16.gmra.mrb[4].mxu1 %v577_v39 }
  0xf6   :  { %v494_v40 = vpop.f32.mrb[0].mxu0 }
  0xf7   :  { %v522_v41 = vpop.f32.mrb[0].mxu1  ;;  %v495_v43 = vpop.f32.mrb[1].mxu0 }
  0xf8   :  { %v496_v44 = vadd.f32 %v495_v43, %v494_v40  ;;  %v523_v45 = vpop.f32.mrb[1].mxu1  ;;  %v497_v46 = vpop.f32.mrb[2].mxu0 }
  0xf9   :  { %v524_v47 = vadd.f32 %v523_v45, %v522_v41  ;;  %v525_v48 = vpop.f32.mrb[2].mxu1  ;;  %v498_v49 = vpop.f32.mrb[3].mxu0 }
  0xfa   :  { %v361_v50 = vadd.f32 %v496_v44, %v437_v42  ;;  %v499_v51 = vadd.f32 %v498_v49, %v497_v46  ;;  %v526_v52 = vpop.f32.mrb[3].mxu1 }
  0xfb   :  { %v527_v53 = vadd.f32 %v526_v52, %v525_v48 }
  0xfc   :  { %v410_v54 = vadd.f32 %v524_v47, %v361_v50  ;;  %v364_v55 = vadd.f32 %v499_v51, %v437_v42 }
  0xfe   :  { %v424_v56 = vmax.f32 %v410_v54, 0.0  ;;  %v413_v57 = vadd.f32 %v527_v53, %v364_v55  ;;  %v500_v58 = vpop.f32.mrb[4].mxu0 }
  0xff   :  { %v528_v59 = vpop.f32.mrb[4].mxu1  ;;  %v501_v60 = vpop.f32.mrb[5].mxu0 }
 0x100   :  { %429 = vst.msk [vmem:[%s740_s3] sm:$0xff] %vm428_vm0, %v424_v56  ;;  %v425_v61 = vmax.f32 %v413_v57, 0.0  ;;  %v502_v62 = vadd.f32 %v501_v60, %v500_v58  ;;  %v529_v63 = vpop.f32.mrb[5].mxu1  ;;  %v503_v0 = vpop.f32.mrb[6].mxu0 }
 0x101   :  { %v530_v1 = vadd.f32 %v529_v63, %v528_v59  ;;  %v531_v2 = vpop.f32.mrb[6].mxu1  ;;  %v504_v3 = vpop.f32.mrb[7].mxu0 }
 0x102   :  { %430 = vst.msk [vmem:[%s740_s3 + $0x8] sm:$0xff] %vm428_vm0, %v425_v61  ;;  %v369_v4 = vadd.f32 %v502_v62, %v437_v42  ;;  %v505_v5 = vadd.f32 %v504_v3, %v503_v0  ;;  %v532_v6 = vpop.f32.mrb[7].mxu1 }
 0x103   :  { %v533_v7 = vadd.f32 %v532_v6, %v531_v2 }
 0x104   :  { %v418_v8 = vadd.f32 %v530_v1, %v369_v4  ;;  %v372_v9 = vadd.f32 %v505_v5, %v437_v42 }
 0x106   :  { %v426_v10 = vmax.f32 %v418_v8, 0.0  ;;  %v421_v11 = vadd.f32 %v533_v7, %v372_v9 }
 0x108   :  { %431 = vst.msk [vmem:[%s740_s3 + $0x10] sm:$0xff] %vm428_vm0, %v426_v10  ;;  %v427_v12 = vmax.f32 %v421_v11, 0.0 }
 0x10a   :  { %432 = vst.msk [vmem:[%s740_s3 + $0x18] sm:$0xff] %vm428_vm0, %v427_v12 }

// kernel: cnn_net_forward.7
= control target key start
LH: loop header
LB: loop body
LE: loop exit
PB: predicated region body
PF: predicated region fallthrough
CT: control target
= control target key end

     0   :  { %v146_v0 = vmov 0.0   ;;  %vm147_vm0 = vmmov 0   ;;  %vm61_vm1 = vcmask 523264   ;;  %vm108_vm2 = vcmask 48128   ;;  %s192_s1 = inlined_call_operand.vmem [shape: bf16[64,6], index: 1, kind: input, shape index: {}]   ;;  %s193_s0 = inlined_call_operand.vmem [shape: bf16[16,64], index: 0, kind: input, shape index: {}]   ;;  %s194_s2 = inlined_call_operand.vmem [shape: f32[1,6], index: 2, kind: input, shape index: {}]   ;;  %s195_s3 = inlined_call_operand.vmem [shape: f32[16,6], index: 3, kind: output, shape index: {}]  }
   0x1   :  { %127 = vmatprep.subr.bf16.mxu0 %v146_v0  ;;  %v141_v1 = vld [vmem:[%s192_s1] sm:$0xff]   ;;  %135 = vmatprep.mubr.msk.bf16.mxu0 %vm147_vm0, %v146_v0  ;;  %v142_v2 = vld [vmem:[%s192_s1 + $0x8] sm:$0xff]   ;;  %v143_v3 = vld [vmem:[%s192_s1 + $0x10] sm:$0xff]  }
   0x2   :  { %128 = vmatpush3.bf16.msra.mxu0 %v141_v1  ;;  %v144_v4 = vld [vmem:[%s192_s1 + $0x18] sm:$0xff]   ;;  %v145_v5 = vld [vmem:[%s193_s0] sm:$0xff]  }
   0x3   :  { %129 = vmatprep.subr.bf16.mxu0 %v146_v0  ;;  %v115_v6 = vld [vmem:[%s194_s2] ss:$0 sm:$0xff] }
   0x6   :  { %130 = vmatpush3.bf16.msra.mxu0 %v142_v2 }
   0x7   :  { %131 = vmatprep.subr.bf16.mxu0 %v146_v0 }
   0xa   :  { %132 = vmatpush3.bf16.msra.mxu0 %v143_v3 }
   0xb   :  { %133 = vmatprep.subr.bf16.mxu0 %v146_v0 }
   0xe   :  { %134 = vmatpush3.bf16.msra.mxu0 %v144_v4 }
  0x11   :  { %136 = vmatmul.mubr.msk.bf16.vlgmr.msra.gmra.mrb[0].mxu0 %vm61_vm1, %v145_v5 }
  0xe4   :  { %v99_v7 = vpop.f32.mrb[0].mxu0 }
  0xe5   :  { %v100_v8 = vadd.f32 %v115_v6, %v99_v7  ;;  %v137_v9 = vpop.f32.mrb[1].mxu0 }
  0xe6   :  { %v102_v10 = vpop.f32.mrb[2].mxu0 }
  0xe7   :  { %v106_v11 = vmax.f32 %v100_v8, 0.0  ;;  %v103_v12 = vadd.f32 %v115_v6, %v102_v10  ;;  %v138_v13 = vpop.f32.mrb[3].mxu0 }
  0xe9   :  { %109 = vst.msk [vmem:[%s195_s3] sm:$0xff] %vm108_vm2, %v106_v11  ;;  %v107_v14 = vmax.f32 %v103_v12, 0.0 }
  0xeb   :  { %110 = vst.msk [vmem:[%s195_s3 + $0x8] sm:$0xff] %vm108_vm2, %v107_v14 }

// kernel: cnn_net_forward.6
= control target key start
LH: loop header
LB: loop body
LE: loop exit
PB: predicated region body
PF: predicated region fallthrough
CT: control target
= control target key end

     0   :  { %v625_v33 = vmov 0.0   ;;  %vm626_vm0 = vmmov 0   ;;  %vm341_vm1 = vcmask 523264   ;;  %s782_s1 = inlined_call_operand.vmem [shape: bf16[576,64], index: 1, kind: input, shape index: {}]   ;;  %s783_s0 = inlined_call_operand.vmem [shape: bf16[16,576], index: 0, kind: input, shape index: {}]   ;;  %s784_s2 = inlined_call_operand.vmem [shape: f32[1,64], index: 2, kind: input, shape index: {}]   ;;  %s785_s3 = inlined_call_operand.vmem [shape: f32[16,64], index: 3, kind: output, shape index: {}]  }
   0x1   :  { %v582_v0 = vld [vmem:[%s782_s1 + $0x40] sm:$0xff]   ;;  %v586_v4 = vld [vmem:[%s782_s1 + $0x48] sm:$0xff]   ;;  %v590_v8 = vld [vmem:[%s782_s1 + $0x50] sm:$0xff]  }
   0x2   :  { %v583_v1 = vld [vmem:[%s782_s1] sm:$0xff]   ;;  %519 = vmatprep.subr.bf16.mxu0 %v582_v0  ;;  %v587_v5 = vld [vmem:[%s782_s1 + $0x8] sm:$0xff]   ;;  %v591_v9 = vld [vmem:[%s782_s1 + $0x10] sm:$0xff]  }
   0x3   :  { %v584_v2 = vld [vmem:[%s782_s1 + $0xc0] sm:$0xff]   ;;  %520 = vmatpush3.bf16.msra.mxu0 %v583_v1  ;;  %v588_v6 = vld [vmem:[%s782_s1 + $0xc8] sm:$0xff]   ;;  %v592_v10 = vld [vmem:[%s782_s1 + $0xd0] sm:$0xff]  }
   0x4   :  { %v585_v3 = vld [vmem:[%s782_s1 + $0x80] sm:$0xff]   ;;  %541 = vmatprep.subr.bf16.mxu1 %v584_v2  ;;  %521 = vmatprep.subr.bf16.mxu0 %v586_v4  ;;  %v589_v7 = vld [vmem:[%s782_s1 + $0x88] sm:$0xff]   ;;  %v593_v11 = vld [vmem:[%s782_s1 + $0x90] sm:$0xff]  }
   0x5   :  { %542 = vmatpush3.bf16.msra.mxu1 %v585_v3  ;;  %v594_v12 = vld [vmem:[%s782_s1 + $0x58] sm:$0xff]   ;;  %v598_v16 = vld [vmem:[%s782_s1 + $0x60] sm:$0xff]   ;;  %v602_v20 = vld [vmem:[%s782_s1 + $0x68] sm:$0xff]  }
   0x6   :  { %543 = vmatprep.subr.bf16.mxu1 %v588_v6  ;;  %v595_v13 = vld [vmem:[%s782_s1 + $0x18] sm:$0xff]   ;;  %v599_v17 = vld [vmem:[%s782_s1 + $0x20] sm:$0xff]   ;;  %v603_v21 = vld [vmem:[%s782_s1 + $0x28] sm:$0xff]  }
   0x7   :  { %522 = vmatpush3.bf16.msra.mxu0 %v587_v5  ;;  %v596_v14 = vld [vmem:[%s782_s1 + $0xd8] sm:$0xff]   ;;  %v600_v18 = vld [vmem:[%s782_s1 + $0xe0] sm:$0xff]   ;;  %v604_v22 = vld [vmem:[%s782_s1 + $0xe8] sm:$0xff]  }
   0x8   :  { %523 = vmatprep.subr.bf16.mxu0 %v590_v8  ;;  %v597_v15 = vld [vmem:[%s782_s1 + $0x98] sm:$0xff]   ;;  %v601_v19 = vld [vmem:[%s782_s1 + $0xa0] sm:$0xff]   ;;  %v605_v23 = vld [vmem:[%s782_s1 + $0xa8] sm:$0xff]  }
   0x9   :  { %544 = vmatpush3.bf16.msra.mxu1 %v589_v7  ;;  %v606_v24 = vld [vmem:[%s782_s1 + $0x70] sm:$0xff]   ;;  %v610_v28 = vld [vmem:[%s782_s1 + $0x78] sm:$0xff]   ;;  %v619_v36 = vld [vmem:[%s783_s0 + $0xc] ss:$20 sps:$4 sm:$0xff]  }
   0xa   :  { %545 = vmatprep.subr.bf16.mxu1 %v592_v10  ;;  %v607_v25 = vld [vmem:[%s782_s1 + $0x30] sm:$0xff]   ;;  %v611_v29 = vld [vmem:[%s782_s1 + $0x38] sm:$0xff]   ;;  %v620_v37 = vld [vmem:[%s782_s1 + $0x100] sm:$0xff]   ;;  %418 = vmatprep.mubr.bf16.mxu1 %v619_v36 }
   0xb   :  { %524 = vmatpush3.bf16.msra.mxu0 %v591_v9  ;;  %v608_v26 = vld [vmem:[%s782_s1 + $0xf0] sm:$0xff]   ;;  %v612_v30 = vld [vmem:[%s782_s1 + $0xf8] sm:$0xff]   ;;  %v621_v38 = vld [vmem:[%s782_s1 + $0x108] sm:$0xff]  }
   0xc   :  { %525 = vmatprep.subr.bf16.mxu0 %v594_v12  ;;  %v609_v27 = vld [vmem:[%s782_s1 + $0xb0] sm:$0xff]   ;;  %v615_v32 = vld [vmem:[%s783_s0 + $0x4] ss:$20 sps:$4 sm:$0xff]   ;;  %v617_v35 = vld [vmem:[%s783_s0 + $0x8] ss:$20 sps:$4 sm:$0xff]  }
   0xd   :  { %546 = vmatpush3.bf16.msra.mxu1 %v593_v11  ;;  %v613_v31 = vld [vmem:[%s783_s0] ss:$20 sps:$4 sm:$0xff]   ;;  %v616_v34 = vld [vmem:[%s782_s1 + $0xb8] sm:$0xff]   ;;  %377 = vmatprep.mubr.bf16.mxu0 %v615_v32  ;;  %v624_v41 = vld [vmem:[%s783_s0 + $0x10] ss:$20 sps:$4 sm:$0xff]  }
   0xe   :  { %547 = vmatprep.subr.bf16.mxu1 %v596_v14  ;;  %v622_v39 = vld [vmem:[%s782_s1 + $0x110] sm:$0xff]   ;;  %v623_v40 = vld [vmem:[%s782_s1 + $0x118] sm:$0xff]   ;;  %v476_v43 = vld [vmem:[%s784_s2] ss:$0 sm:$0xff] }
   0xf   :  { %526 = vmatpush3.bf16.msra.mxu0 %v595_v13 }
  0x10   :  { %527 = vmatprep.subr.bf16.mxu0 %v598_v16 }
  0x11   :  { %548 = vmatpush3.bf16.msra.mxu1 %v597_v15 }
  0x12   :  { %549 = vmatprep.subr.bf16.mxu1 %v600_v18 }
  0x13   :  { %528 = vmatpush3.bf16.msra.mxu0 %v599_v17 }
  0x14   :  { %529 = vmatprep.subr.bf16.mxu0 %v602_v20 }
  0x15   :  { %550 = vmatpush3.bf16.msra.mxu1 %v601_v19 }
  0x16   :  { %551 = vmatprep.subr.bf16.mxu1 %v604_v22 }
  0x17   :  { %530 = vmatpush3.bf16.msra.mxu0 %v603_v21 }
  0x18   :  { %531 = vmatprep.subr.bf16.mxu0 %v606_v24 }
  0x19   :  { %552 = vmatpush3.bf16.msra.mxu1 %v605_v23 }
  0x1a   :  { %553 = vmatprep.subr.bf16.mxu1 %v608_v26 }
  0x1b   :  { %532 = vmatpush3.bf16.msra.mxu0 %v607_v25 }
  0x1c   :  { %533 = vmatprep.subr.bf16.mxu0 %v610_v28 }
  0x1d   :  { %554 = vmatpush3.bf16.msra.mxu1 %v609_v27 }
  0x1e   :  { %555 = vmatprep.subr.bf16.mxu1 %v612_v30 }
  0x1f   :  { %534 = vmatpush3.bf16.msra.mxu0 %v611_v29 }
  0x20   :  { %568 = vmatprep.subr.bf16.mxu0 %v625_v33 }
  0x21   :  { %556 = vmatpush3.bf16.msra.mxu1 %v616_v34 }
  0x22   :  { %378 = vmatmul.mubr.bf16.vlgmr.msra.gmra.mrb[0].mxu0 %v613_v31 }
  0x23   :  { %576 = vmatprep.mubr.msk.bf16.mxu0 %vm626_vm0, %v625_v33  ;;  %569 = vmatpush3.bf16.msra.mxu0 %v620_v37 }
  0x24   :  { %419 = vmatmul.mubr.bf16.vlgmr.msra.gmra.mrb[0].mxu1 %v617_v35  ;;  %570 = vmatprep.subr.bf16.mxu0 %v625_v33 }
  0x27   :  { %571 = vmatpush3.bf16.msra.mxu0 %v621_v38 }
  0x28   :  { %572 = vmatprep.subr.bf16.mxu0 %v625_v33 }
  0x2b   :  { %573 = vmatpush3.bf16.msra.mxu0 %v622_v39 }
  0x2c   :  { %574 = vmatprep.subr.bf16.mxu0 %v625_v33 }
  0x2f   :  { %575 = vmatpush3.bf16.msra.mxu0 %v623_v40 }
  0x32   :  { %577 = vmatmul.mubr.msk.bf16.vlgmr.msra.gmra.mrb[4].mxu0 %vm341_vm1, %v624_v41 }
  0xf5   :  { %v535_v42 = vpop.f32.mrb[0].mxu0 }
  0xf6   :  { %v536_v44 = vpop.f32.mrb[1].mxu0 }
  0xf7   :  { %v537_v45 = vadd.f32 %v536_v44, %v535_v42  ;;  %v538_v46 = vpop.f32.mrb[2].mxu0  ;;  %v557_v47 = vpop.f32.mrb[0].mxu1 }
  0xf8   :  { %v539_v48 = vpop.f32.mrb[3].mxu0  ;;  %v558_v51 = vpop.f32.mrb[1].mxu1 }
  0xf9   :  { %v380_v49 = vadd.f32 %v537_v45, %v476_v43  ;;  %v540_v50 = vadd.f32 %v539_v48, %v538_v46  ;;  %v559_v52 = vadd.f32 %v558_v51, %v557_v47  ;;  %v560_v53 = vpop.f32.mrb[2].mxu1 }
  0xfa   :  { %v561_v55 = vpop.f32.mrb[3].mxu1 }
  0xfb   :  { %v383_v54 = vadd.f32 %v540_v50, %v476_v43  ;;  %v562_v56 = vadd.f32 %v561_v55, %v560_v53  ;;  %v421_v57 = vadd.f32 %v559_v52, %v380_v49 }
  0xfd   :  { %v424_v58 = vadd.f32 %v562_v56, %v383_v54 }
 0x105   :  { %v461_v59 = vpop.f32.mrb[4].mxu0 }
 0x106   :  { %v462_v60 = vadd.f32 %v461_v59, %v421_v57  ;;  %v578_v61 = vpop.f32.mrb[5].mxu0 }
 0x107   :  { %v464_v62 = vpop.f32.mrb[6].mxu0 }
 0x108   :  { %v468_v63 = vmax.f32 %v462_v60, 0.0  ;;  %v465_v0 = vadd.f32 %v464_v62, %v424_v58  ;;  %v579_v1 = vpop.f32.mrb[7].mxu0 }
 0x10a   :  { %470 = vst.msk [vmem:[%s785_s3] sm:$0xff] %vm341_vm1, %v468_v63  ;;  %v469_v2 = vmax.f32 %v465_v0, 0.0 }
 0x10c   :  { %471 = vst.msk [vmem:[%s785_s3 + $0x8] sm:$0xff] %vm341_vm1, %v469_v2 }

</bundles_post_ra>
